<compile_context>
chip_gen: v7x
topology: tpu7x:2x2x1
jax: 0.10.0
libtpu: 0.0.40
codegen_flags: <defaults>
</compile_context>

<pallas_src>
import functools

import jax
import jax.numpy as jnp
from jax import lax
from jax.experimental import pallas as pl
from jax.experimental.pallas import tpu as pltpu

IMG_DIM = 28 * 28    # 784
HIDDEN = 128
_SUBLANE = 8         # f32 sublane tile (x and output blocks are f32)


def _round_up(n, m):
    return ((n + m - 1) // m) * m


def _discriminator_kernel(x_ref,
                          w1_ref, b1_ref,
                          w2_ref, b2_ref,
                          w3_ref, b3_ref,
                          w4_ref, b4_ref,
                          o_ref):
    """Fused MLP forward for one batch tile; weights resident in VMEM.

    x arrives as raw f32 (tile_b, 784) and is cast to the MXU dtype on the VPU
    right before the first matmul. Matmuls accumulate in f32; bias/ReLU/tanh
    stay in f32 on the VPU/EUP.
    """
    x = x_ref[...].astype(w1_ref.dtype)                                   # (TB, 784)

    h = jnp.dot(x, w1_ref[...], preferred_element_type=jnp.float32)      # (TB, 128)
    h = jnp.maximum(h + b1_ref[...], 0.0)

    h = jnp.dot(h.astype(w2_ref.dtype), w2_ref[...],
                preferred_element_type=jnp.float32)
    h = jnp.maximum(h + b2_ref[...], 0.0)

    h = jnp.dot(h.astype(w3_ref.dtype), w3_ref[...],
                preferred_element_type=jnp.float32)
    h = jnp.maximum(h + b3_ref[...], 0.0)

    # Final Linear(128 -> 1): (1,128) x (TB,128)^T -> (1,TB). This produces the
    # logits directly as a lane-dense row (no (TB,1) masked-store column and no
    # in-kernel relayout). M=1 under-fills the MXU, but the MXU is idle here.
    logit = lax.dot_general(w4_ref[...], h,
                            dimension_numbers=(((1,), (1,)), ((), ())),
                            preferred_element_type=jnp.float32)           # (1, TB)
    logit = logit + b4_ref[...]
    o_ref[...] = jnp.tanh(logit).reshape(o_ref.shape).astype(o_ref.dtype)


@functools.partial(jax.jit, static_argnames=("block_b", "use_bf16"))
def discriminator_forward(img, params, *, block_b=1024, use_bf16=True):
    """img: (B, C, H, W) or (B, img_dim) float32. Returns (B, 1) float32."""
    B = img.shape[0]
    x = img.reshape(B, -1).astype(jnp.float32)       # == torch img.view(B, -1)
    assert x.shape[1] == IMG_DIM

    w1, b1, w2, b2, w3, b3, w4, b4 = params
    mxu_dtype = jnp.bfloat16 if use_bf16 else jnp.float32

    # Batch tile: as large as block_b allows (amortizes ~0.35us/step grid
    # overhead), sublane-aligned, but capped so the grid keeps >= 2 steps when
    # the batch permits -- the "parallel" axis then shards across v7x's two
    # TensorCores (no-op on single-TC v5e/v6e).
    tile_b = _round_up(min(block_b, _round_up(B, _SUBLANE)), _SUBLANE)
    Bp = _round_up(B, tile_b)
    if Bp // tile_b < 2 and Bp >= 2 * _SUBLANE:
        tile_b = _round_up(Bp // 2, _SUBLANE)
        Bp = _round_up(B, tile_b)
    num_tiles = Bp // tile_b

    # Only the ragged batch tail is padded. x stays f32 and unpadded in the
    # feature dim: 784 equals the full array's last dim, so it is a legal tile.
    xp = x if Bp == B else jnp.pad(x, ((0, Bp - B), (0, 0)))

    w1c = w1.astype(mxu_dtype)
    w2c = w2.astype(mxu_dtype)
    w3c = w3.astype(mxu_dtype)
    w4_row = w4.reshape(1, HIDDEN).astype(jnp.float32)   # final layer stays f32
    b1f = b1.astype(jnp.float32)
    b2f = b2.astype(jnp.float32)
    b3f = b3.astype(jnp.float32)
    b4f = b4.reshape(1, 1).astype(jnp.float32)

    # Weights/biases are grid-invariant: same block (index 0) every step.
    def rep(shape):
        return pl.BlockSpec(shape, lambda i: (0,) * len(shape))

    w_itemsize = jnp.dtype(mxu_dtype).itemsize
    flops = 2 * Bp * (IMG_DIM * HIDDEN + 2 * HIDDEN * HIDDEN + HIDDEN)
    bytes_accessed = (
        Bp * IMG_DIM * 4                                  # x stream, f32 (dominant)
        + (IMG_DIM * HIDDEN + 2 * HIDDEN * HIDDEN) * w_itemsize
        + (HIDDEN + 3 * HIDDEN + 1) * 4                   # w4 row + biases (f32)
        + Bp * 4)                                         # output
    cost = pl.CostEstimate(flops=flops, transcendentals=Bp,
                           bytes_accessed=int(bytes_accessed))

    # Explicit scoped-VMEM budget: double-buffered x/out tiles + resident
    # weights + headroom for intermediates/compiler scratch (v5e default is
    # only 16 MiB; keep under v7x's 64 MiB physical per-TC VMEM).
    vmem_est = (
        2 * tile_b * IMG_DIM * 4                          # x tile, double-buffered
        + 2 * tile_b * 4                                  # output tile
        + 2 * (IMG_DIM * HIDDEN + 2 * HIDDEN * HIDDEN) * w_itemsize
        + 2 * (4 * HIDDEN + 1) * 4
        + 4 * tile_b * HIDDEN * 4                         # hidden activations
        + (4 << 20))                                      # slack
    vmem_limit = int(min(max(vmem_est, 16 << 20), 64 << 20))

    out = pl.pallas_call(
        _discriminator_kernel,
        out_shape=jax.ShapeDtypeStruct((num_tiles, 1, tile_b), jnp.float32),
        grid_spec=pltpu.PrefetchScalarGridSpec(
            num_scalar_prefetch=0,
            grid=(num_tiles,),
            in_specs=[
                pl.BlockSpec((tile_b, IMG_DIM), lambda i: (i, 0)),   # raw f32 x tile
                rep((IMG_DIM, HIDDEN)), rep((1, HIDDEN)),            # layer 1
                rep((HIDDEN, HIDDEN)),  rep((1, HIDDEN)),            # layer 2
                rep((HIDDEN, HIDDEN)),  rep((1, HIDDEN)),            # layer 3
                rep((1, HIDDEN)),       rep((1, 1)),                 # layer 4
            ],
            out_specs=pl.BlockSpec((1, 1, tile_b), lambda i: (i, 0, 0)),
        ),
        compiler_params=pltpu.CompilerParams(
            dimension_semantics=("parallel",),
            vmem_limit_bytes=vmem_limit),
        cost_estimate=cost,
    )(xp, w1c, b1f, w2c, b2f, w3c, b3f, w4_row, b4f)

    # (num_tiles, 1, tile_b) row-major == batch order; drop padded tail rows.
    return out.reshape(Bp, 1)[:B]


def init_params(key):
    """Deterministic init mirroring nn.Linear default U(-1/sqrt(fan_in), +1/sqrt(fan_in)).

    Weights are stored transposed relative to PyTorch: shape (in, out).
    """
    dims = [(IMG_DIM, HIDDEN), (HIDDEN, HIDDEN), (HIDDEN, HIDDEN), (HIDDEN, 1)]
    params = []
    for (fan_in, fan_out) in dims:
        key, kw, kb = jax.random.split(key, 3)
        bound = 1.0 / jnp.sqrt(fan_in)
        w = jax.random.uniform(kw, (fan_in, fan_out), jnp.float32, -bound, bound)
        b = jax.random.uniform(kb, (1, fan_out), jnp.float32, -bound, bound)
        params += [w, b]
    return tuple(params)


def _reference_forward(img, params):
    """Plain-JAX f32 reference for correctness checking."""
    x = img.reshape(img.shape[0], -1)
    w1, b1, w2, b2, w3, b3, w4, b4 = params
    h = jnp.maximum(x @ w1 + b1, 0.0)
    h = jnp.maximum(h @ w2 + b2, 0.0)
    h = jnp.maximum(h @ w3 + b3, 0.0)
    return jnp.tanh(h @ w4 + b4)


if __name__ == "__main__":
    key = jax.random.PRNGKey(0)
    k_img, k_img2, k_par = jax.random.split(key, 3)

    params = init_params(k_par)

    # --- f32 path: tight numerical check vs reference (single small tile). ---
    B = 8
    img = jax.random.normal(k_img, (B, 1, 28, 28), dtype=jnp.float32)
    out_f32 = jax.block_until_ready(
        discriminator_forward(img, params, block_b=256, use_bf16=False))
    ref = _reference_forward(img, params)
    assert out_f32.shape == (B, 1)
    assert jnp.allclose(out_f32, ref, atol=1e-4, rtol=1e-4), "f32 mismatch vs reference"

    # --- bf16 MXU path: multi-tile grid + ragged batch tail. ---
    B2 = 24
    img2 = jax.random.normal(k_img2, (B2, 1, 28, 28), dtype=jnp.float32)
    out_bf16 = jax.block_until_ready(
        discriminator_forward(img2, params, block_b=16, use_bf16=True))
    ref2 = _reference_forward(img2, params)
    assert out_bf16.shape == (B2, 1)
    # bf16 matmul inputs, f32 accumulation: loose absolute tolerance on tanh output.
    assert jnp.max(jnp.abs(out_bf16 - ref2)) < 3e-2, "bf16 mismatch vs f32 reference"

    # --- default config path (block_b=1024, bf16): shape + tolerance sanity. ---
    out_def = jax.block_until_ready(discriminator_forward(img2, params))
    assert out_def.shape == (B2, 1)
    assert jnp.max(jnp.abs(out_def - ref2)) < 3e-2, "default-path mismatch"

    print("KERNEL_OK")
</pallas_src>

<mosaic_0001>
module attributes {stable_mosaic.version = 11 : i64} {
  func.func @_discriminator_kernel(%arg0: i32, %arg1: memref<8x784xf32, #tpu.memory_space<vmem>>, %arg2: memref<784x128xf32, #tpu.memory_space<vmem>>, %arg3: memref<1x128xf32, #tpu.memory_space<vmem>>, %arg4: memref<128x128xf32, #tpu.memory_space<vmem>>, %arg5: memref<1x128xf32, #tpu.memory_space<vmem>>, %arg6: memref<128x128xf32, #tpu.memory_space<vmem>>, %arg7: memref<1x128xf32, #tpu.memory_space<vmem>>, %arg8: memref<1x128xf32, #tpu.memory_space<vmem>>, %arg9: memref<1x1xf32, #tpu.memory_space<vmem>>, %arg10: memref<1x1x8xf32, #tpu.memory_space<vmem>>) attributes {dimension_semantics = [#tpu.dimension_semantics<parallel>], iteration_bounds = array<i64: 1>, scalar_prefetch = 0 : i64, scratch_operands = 0 : i64, tpu.core_type = #tpu.core_type<tc>, window_params = [{transform_indices = @transform_0, window_bounds = array<i64: 8, 784>}, {pipeline_mode = #tpu.pipeline_mode<synchronous>, transform_indices = @transform_1, window_bounds = array<i64: 784, 128>}, {pipeline_mode = #tpu.pipeline_mode<synchronous>, transform_indices = @transform_2, window_bounds = array<i64: 1, 128>}, {pipeline_mode = #tpu.pipeline_mode<synchronous>, transform_indices = @transform_3, window_bounds = array<i64: 128, 128>}, {pipeline_mode = #tpu.pipeline_mode<synchronous>, transform_indices = @transform_4, window_bounds = array<i64: 1, 128>}, {pipeline_mode = #tpu.pipeline_mode<synchronous>, transform_indices = @transform_5, window_bounds = array<i64: 128, 128>}, {pipeline_mode = #tpu.pipeline_mode<synchronous>, transform_indices = @transform_6, window_bounds = array<i64: 1, 128>}, {pipeline_mode = #tpu.pipeline_mode<synchronous>, transform_indices = @transform_7, window_bounds = array<i64: 1, 128>}, {pipeline_mode = #tpu.pipeline_mode<synchronous>, transform_indices = @transform_8, window_bounds = array<i64: 1, 1>}, {transform_indices = @transform_9, window_bounds = array<i64: 1, 1, 8>}]} {
    %c0 = arith.constant 0 : index
    %c0_0 = arith.constant 0 : index
    %0 = vector.load %arg1[%c0, %c0_0] : memref<8x784xf32, #tpu.memory_space<vmem>>, vector<8x784xf32>
    %c0_1 = arith.constant 0 : index
    %c0_2 = arith.constant 0 : index
    %1 = vector.load %arg2[%c0_1, %c0_2] : memref<784x128xf32, #tpu.memory_space<vmem>>, vector<784x128xf32>
    %cst = arith.constant dense<0.000000e+00> : vector<8x128xf32>
    %2 = tpu.matmul %0, %1, %cst {dimension_numbers = #tpu.dot_dimension_numbers<[1], [0], [0], [1], [0, 0, 1, 1], [], []>} : vector<8x784xf32>, vector<784x128xf32>, vector<8x128xf32> -> vector<8x128xf32>
    %c0_3 = arith.constant 0 : index
    %c0_4 = arith.constant 0 : index
    %3 = vector.load %arg3[%c0_3, %c0_4] : memref<1x128xf32, #tpu.memory_space<vmem>>, vector<1x128xf32>
    %4 = vector.broadcast %3 : vector<1x128xf32> to vector<8x128xf32>
    %5 = arith.addf %2, %4 : vector<8x128xf32>
    %cst_5 = arith.constant 0.000000e+00 : f32
    %6 = vector.broadcast %cst_5 : f32 to vector<8x128xf32>
    %7 = arith.maximumf %5, %6 : vector<8x128xf32>
    %c0_6 = arith.constant 0 : index
    %c0_7 = arith.constant 0 : index
    %8 = vector.load %arg4[%c0_6, %c0_7] : memref<128x128xf32, #tpu.memory_space<vmem>>, vector<128x128xf32>
    %cst_8 = arith.constant dense<0.000000e+00> : vector<8x128xf32>
    %9 = tpu.matmul %7, %8, %cst_8 {dimension_numbers = #tpu.dot_dimension_numbers<[1], [0], [0], [1], [0, 0, 1, 1], [], []>} : vector<8x128xf32>, vector<128x128xf32>, vector<8x128xf32> -> vector<8x128xf32>
    %c0_9 = arith.constant 0 : index
    %c0_10 = arith.constant 0 : index
    %10 = vector.load %arg5[%c0_9, %c0_10] : memref<1x128xf32, #tpu.memory_space<vmem>>, vector<1x128xf32>
    %11 = vector.broadcast %10 : vector<1x128xf32> to vector<8x128xf32>
    %12 = arith.addf %9, %11 : vector<8x128xf32>
    %cst_11 = arith.constant 0.000000e+00 : f32
    %13 = vector.broadcast %cst_11 : f32 to vector<8x128xf32>
    %14 = arith.maximumf %12, %13 : vector<8x128xf32>
    %c0_12 = arith.constant 0 : index
    %c0_13 = arith.constant 0 : index
    %15 = vector.load %arg6[%c0_12, %c0_13] : memref<128x128xf32, #tpu.memory_space<vmem>>, vector<128x128xf32>
    %cst_14 = arith.constant dense<0.000000e+00> : vector<8x128xf32>
    %16 = tpu.matmul %14, %15, %cst_14 {dimension_numbers = #tpu.dot_dimension_numbers<[1], [0], [0], [1], [0, 0, 1, 1], [], []>} : vector<8x128xf32>, vector<128x128xf32>, vector<8x128xf32> -> vector<8x128xf32>
    %c0_15 = arith.constant 0 : index
    %c0_16 = arith.constant 0 : index
    %17 = vector.load %arg7[%c0_15, %c0_16] : memref<1x128xf32, #tpu.memory_space<vmem>>, vector<1x128xf32>
    %18 = vector.broadcast %17 : vector<1x128xf32> to vector<8x128xf32>
    %19 = arith.addf %16, %18 : vector<8x128xf32>
    %cst_17 = arith.constant 0.000000e+00 : f32
    %20 = vector.broadcast %cst_17 : f32 to vector<8x128xf32>
    %21 = arith.maximumf %19, %20 : vector<8x128xf32>
    %c0_18 = arith.constant 0 : index
    %c0_19 = arith.constant 0 : index
    %22 = vector.load %arg8[%c0_18, %c0_19] : memref<1x128xf32, #tpu.memory_space<vmem>>, vector<1x128xf32>
    %cst_20 = arith.constant dense<0.000000e+00> : vector<1x8xf32>
    %23 = tpu.matmul %22, %21, %cst_20 {dimension_numbers = #tpu.dot_dimension_numbers<[1], [1], [0], [0], [0, 0, 1, 0], [], []>} : vector<1x128xf32>, vector<8x128xf32>, vector<1x8xf32> -> vector<1x8xf32>
    %c0_21 = arith.constant 0 : index
    %c0_22 = arith.constant 0 : index
    %24 = vector.load %arg9[%c0_21, %c0_22] : memref<1x1xf32, #tpu.memory_space<vmem>>, vector<1x1xf32>
    %25 = vector.broadcast %24 : vector<1x1xf32> to vector<1x8xf32>
    %26 = arith.addf %23, %25 : vector<1x8xf32>
    %27 = math.tanh %26 : vector<1x8xf32>
    %28 = vector.shape_cast %27 : vector<1x8xf32> to vector<1x1x8xf32>
    %c0_23 = arith.constant 0 : index
    %c0_24 = arith.constant 0 : index
    %c0_25 = arith.constant 0 : index
    %29 = vector.load %arg10[%c0_23, %c0_24, %c0_25] : memref<1x1x8xf32, #tpu.memory_space<vmem>>, vector<1x1x8xf32>
    tpu.vector_store %arg10[%c0_23, %c0_24, %c0_25], %28 {strides = array<i32>} : memref<1x1x8xf32, #tpu.memory_space<vmem>>, vector<1x1x8xf32>,
    return
  }
  func.func @transform_0(%arg0: i32) -> (i32, i32) {
    %c0_i32 = arith.constant 0 : i32
    %c0_i32_0 = arith.constant 0 : i32
    return %arg0, %c0_i32 : i32, i32
  }
  func.func @transform_1(%arg0: i32) -> (i32, i32) {
    %c0_i32 = arith.constant 0 : i32
    %c0_i32_0 = arith.constant 0 : i32
    %c0_i32_1 = arith.constant 0 : i32
    return %c0_i32, %c0_i32_0 : i32, i32
  }
  func.func @transform_2(%arg0: i32) -> (i32, i32) {
    %c0_i32 = arith.constant 0 : i32
    %c0_i32_0 = arith.constant 0 : i32
    %c0_i32_1 = arith.constant 0 : i32
    return %c0_i32, %c0_i32_0 : i32, i32
  }
  func.func @transform_3(%arg0: i32) -> (i32, i32) {
    %c0_i32 = arith.constant 0 : i32
    %c0_i32_0 = arith.constant 0 : i32
    %c0_i32_1 = arith.constant 0 : i32
    return %c0_i32, %c0_i32_0 : i32, i32
  }
  func.func @transform_4(%arg0: i32) -> (i32, i32) {
    %c0_i32 = arith.constant 0 : i32
    %c0_i32_0 = arith.constant 0 : i32
    %c0_i32_1 = arith.constant 0 : i32
    return %c0_i32, %c0_i32_0 : i32, i32
  }
  func.func @transform_5(%arg0: i32) -> (i32, i32) {
    %c0_i32 = arith.constant 0 : i32
    %c0_i32_0 = arith.constant 0 : i32
    %c0_i32_1 = arith.constant 0 : i32
    return %c0_i32, %c0_i32_0 : i32, i32
  }
  func.func @transform_6(%arg0: i32) -> (i32, i32) {
    %c0_i32 = arith.constant 0 : i32
    %c0_i32_0 = arith.constant 0 : i32
    %c0_i32_1 = arith.constant 0 : i32
    return %c0_i32, %c0_i32_0 : i32, i32
  }
  func.func @transform_7(%arg0: i32) -> (i32, i32) {
    %c0_i32 = arith.constant 0 : i32
    %c0_i32_0 = arith.constant 0 : i32
    %c0_i32_1 = arith.constant 0 : i32
    return %c0_i32, %c0_i32_0 : i32, i32
  }
  func.func @transform_8(%arg0: i32) -> (i32, i32) {
    %c0_i32 = arith.constant 0 : i32
    %c0_i32_0 = arith.constant 0 : i32
    %c0_i32_1 = arith.constant 0 : i32
    return %c0_i32, %c0_i32_0 : i32, i32
  }
  func.func @transform_9(%arg0: i32) -> (i32, i32, i32) {
    %c0_i32 = arith.constant 0 : i32
    %c0_i32_0 = arith.constant 0 : i32
    %c0_i32_1 = arith.constant 0 : i32
    return %arg0, %c0_i32, %c0_i32_0 : i32, i32, i32
  }
}

</mosaic_0001>

<bundles_post_ra>
// kernel: discriminator_forward.1
= control target key start
LH: loop header
LB: loop body
LE: loop exit
PB: predicated region body
PF: predicated region fallthrough
CT: control target
= control target key end

     0   :  { %s1660_s0 = inlined_call_operand.vmem [shape: f32[8,784], index: 0, kind: input, shape index: {}]   ;;  %s1661_s1 = inlined_call_operand.vmem [shape: f32[784,128], index: 1, kind: input, shape index: {}]   ;;  %s1662_s2 = inlined_call_operand.vmem [shape: f32[1,128], index: 2, kind: input, shape index: {}]   ;;  %s1663_s3 = inlined_call_operand.hbm [shape: f32[128,128], index: 3, kind: input, shape index: {}]   ;;  %s1664_s4 = inlined_call_operand.vmem [shape: f32[1,128], index: 4, kind: input, shape index: {}]   ;;  %s1665_s5 = inlined_call_operand.hbm [shape: f32[128,128], index: 5, kind: input, shape index: {}]   ;;  %s1666_s6 = inlined_call_operand.vmem [shape: f32[1,128], index: 6, kind: input, shape index: {}]   ;;  %s1667_s7 = inlined_call_operand.vmem [shape: f32[1,128], index: 7, kind: input, shape index: {}]   ;;  %s1668_s8 = inlined_call_operand.<no memory space> [shape: f32[1,1], index: 8, kind: input, shape index: {}]   ;;  %s1669_s9 = inlined_call_operand.hbm [shape: f32[1,1,8], index: 9, kind: output, shape index: {}]  }
   0x1   :  { %v14_v0 = vstv %s1668_s8 }
   0x2   :  { %15 = vst [vmem:[#allocation2] sm:$0x1] %v14_v0 }
   0x3   :  { %16 = vsyncpa [#allocation4], 0 }
   0x4   :  { %17 = vsyncpa [#allocation7], 0 }
   0x5   :  { %18 = vsyncpa [#allocation5], 0  ;;  %s1209_s11 = smov [#allocation3]   ;;  %s1137_s15 = scalar_lea.hbm %s1663_s3, 2048 }
   0x6   :  { %s30_s12 = sshll.u32 %s1209_s11, 4  ;;  %p1138_p0 = scmp.ne.s32.totalorder %s1663_s3, %s1137_s15  ;;  %s31_s12 = int_to_ptr.vmem [resolvable:$true] %s30_s12 }
   0x7   :  { %p1141_p1 = scmp.lt.u32.totalorder %s1137_s15, %s1663_s3 }
   0x9   :  { %p1143_p2 = pnand %p1141_p1, %p1138_p0 }
   0xb   :  { %1146 = shalt.err (!%p1143_p2)
}
   0xc   :  { %s1147_s8 = scalar_lea.vmem %s31_s12, 2048  ;;  %p1152_p4 = scmp.lt.s32.totalorder %s31_s12, %s31_s12 }
   0xd   :  { %p1148_p3 = scmp.ne.s32.totalorder %s31_s12, %s1147_s8  ;;  %p1153_p5 = scmp.lt.s32.totalorder %s1147_s8, %s1147_s8 }
   0xf   :  { %p1154_p6 = por %p1153_p5, %p1152_p4 }
  0x11   :  { %p1155_p7 = pnand %p1154_p6, %p1148_p3 }
  0x13   :  { %1158 = shalt.err (!%p1155_p7)
}
  0x14   :  { %s1210_s20 = smov 128   ;;  %s1211_s21 = smov 8  }
  0x15   :  { %36 = dma.hbm_to_vmem [thread:$0]  %s1663_s3, 2048, %s31_s12, [#allocation4], %s1210_s20, %s1210_s20, %s1211_s21  }
  0x16   :  { %s1212_s24 = smov [#allocation6]   ;;  %s1159_s28 = scalar_lea.hbm %s1665_s5, 2048 }
  0x17   :  { %s44_s25 = sshll.u32 %s1212_s24, 4  ;;  %p1160_p8 = scmp.ne.s32.totalorder %s1665_s5, %s1159_s28  ;;  %s45_s25 = int_to_ptr.vmem [resolvable:$true] %s44_s25 }
  0x18   :  { %p1163_p9 = scmp.lt.u32.totalorder %s1159_s28, %s1665_s5 }
  0x1a   :  { %p1165_p10 = pnand %p1163_p9, %p1160_p8 }
  0x1c   :  { %1168 = shalt.err (!%p1165_p10)
}
  0x1d   :  { %s1169_s13 = scalar_lea.vmem %s45_s25, 2048  ;;  %p1174_p12 = scmp.lt.s32.totalorder %s45_s25, %s45_s25 }
  0x1e   :  { %p1170_p11 = scmp.ne.s32.totalorder %s45_s25, %s1169_s13  ;;  %p1175_p13 = scmp.lt.s32.totalorder %s1169_s13, %s1169_s13 }
  0x20   :  { %p1176_p0 = por %p1175_p13, %p1174_p12 }
  0x22   :  { %p1177_p1 = pnand %p1176_p0, %p1170_p11 }
  0x24   :  { %1180 = shalt.err (!%p1177_p1)
}
  0x25   :  { %50 = dma.hbm_to_vmem [thread:$0]  %s1665_s5, 2048, %s45_s25, [#allocation7], %s1210_s20, %s1210_s20, %s1211_s21  }
  0x26   :  { %1203 = dma.done.wait [#allocation4], 2048  }
  0x27   :  { %1204 = vsyncadd [#allocation4], 4294965248 }
  0x28   :  { %1205 = dma.done.wait [#allocation7], 2048  }
  0x29   :  { %1206 = vsyncadd [#allocation7], 4294965248  ;;  %v86_v1 = vld [vmem:[%s1661_s1 + $0x80] sm:$0xff]  ;;  %v87_v2 = vld [vmem:[%s1661_s1 + $0x88] sm:$0xff]  ;;  %vm1214_vm0 = vmmov 0   ;;  %vm175_vm1 = vcmask 130048  }
  0x2a   :  { %v70_v3 = vld [vmem:[%s1661_s1] sm:$0xff]  ;;  %v978_v4 = vpack.c.bf16 %v87_v2, %v86_v1  ;;  %v71_v5 = vld [vmem:[%s1661_s1 + $0x8] sm:$0xff]  ;;  %v88_v12 = vld [vmem:[%s1661_s1 + $0x90] sm:$0xff]  ;;  %vm730_vm2 = vcmask 57344  }
  0x2b   :  { %v118_v6 = vld [vmem:[%s1661_s1 + $0x180] sm:$0xff]  ;;  %v119_v7 = vld [vmem:[%s1661_s1 + $0x188] sm:$0xff]  ;;  %v980_v8 = vpack.c.bf16 %v71_v5, %v70_v3  ;;  %v89_v14 = vld [vmem:[%s1661_s1 + $0x98] sm:$0xff] }
  0x2c   :  { %v1010_v9 = vpack.c.bf16 %v119_v7, %v118_v6  ;;  %v102_v10 = vld [vmem:[%s1661_s1 + $0x100] sm:$0xff]  ;;  %v103_v11 = vld [vmem:[%s1661_s1 + $0x108] sm:$0xff]  ;;  %979 = vmatprep.subr.bf16.mxu0 %v978_v4  ;;  %v72_v15 = vld [vmem:[%s1661_s1 + $0x10] sm:$0xff]  ;;  %v982_v17 = vpack.c.bf16 %v89_v14, %v88_v12 }
  0x2d   :  { %v1012_v13 = vpack.c.bf16 %v103_v11, %v102_v10  ;;  %v73_v16 = vld [vmem:[%s1661_s1 + $0x18] sm:$0xff]  ;;  %981 = vmatpush3.bf16.msra.mxu0 %v980_v8  ;;  %v120_v19 = vld [vmem:[%s1661_s1 + $0x190] sm:$0xff]  ;;  %v90_v24 = vld [vmem:[%s1661_s1 + $0xa0] sm:$0xff] }
  0x2e   :  { %1011 = vmatprep.subr.bf16.mxu1 %v1010_v9  ;;  %v984_v18 = vpack.c.bf16 %v73_v16, %v72_v15  ;;  %v121_v20 = vld [vmem:[%s1661_s1 + $0x198] sm:$0xff]  ;;  %v104_v21 = vld [vmem:[%s1661_s1 + $0x110] sm:$0xff]  ;;  %v91_v25 = vld [vmem:[%s1661_s1 + $0xa8] sm:$0xff]  ;;  %983 = vmatprep.subr.bf16.mxu0 %v982_v17 }
  0x2f   :  { %1013 = vmatpush3.bf16.msra.mxu1 %v1012_v13  ;;  %v1014_v22 = vpack.c.bf16 %v121_v20, %v120_v19  ;;  %v105_v23 = vld [vmem:[%s1661_s1 + $0x118] sm:$0xff]  ;;  %v986_v27 = vpack.c.bf16 %v91_v25, %v90_v24  ;;  %v74_v28 = vld [vmem:[%s1661_s1 + $0x20] sm:$0xff]  ;;  %v75_v29 = vld [vmem:[%s1661_s1 + $0x28] sm:$0xff] }
  0x30   :  { %v1016_v26 = vpack.c.bf16 %v105_v23, %v104_v21  ;;  %v122_v30 = vld [vmem:[%s1661_s1 + $0x1a0] sm:$0xff]  ;;  %v123_v31 = vld [vmem:[%s1661_s1 + $0x1a8] sm:$0xff]  ;;  %v988_v34 = vpack.c.bf16 %v75_v29, %v74_v28  ;;  %v92_v36 = vld [vmem:[%s1661_s1 + $0xb0] sm:$0xff] }
  0x31   :  { %1015 = vmatprep.subr.bf16.mxu1 %v1014_v22  ;;  %v106_v32 = vld [vmem:[%s1661_s1 + $0x120] sm:$0xff]  ;;  %v107_v33 = vld [vmem:[%s1661_s1 + $0x128] sm:$0xff]  ;;  %985 = vmatpush3.bf16.msra.mxu0 %v984_v18  ;;  %v1018_v35 = vpack.c.bf16 %v123_v31, %v122_v30  ;;  %v93_v37 = vld [vmem:[%s1661_s1 + $0xb8] sm:$0xff] }
  0x32   :  { %v76_v38 = vld [vmem:[%s1661_s1 + $0x30] sm:$0xff]  ;;  %987 = vmatprep.subr.bf16.mxu0 %v986_v27  ;;  %v1020_v39 = vpack.c.bf16 %v107_v33, %v106_v32  ;;  %v990_v40 = vpack.c.bf16 %v93_v37, %v92_v36  ;;  %v77_v41 = vld [vmem:[%s1661_s1 + $0x38] sm:$0xff]  ;;  %v94_v47 = vld [vmem:[%s1661_s1 + $0xc0] sm:$0xff] }
  0x33   :  { %1017 = vmatpush3.bf16.msra.mxu1 %v1016_v26  ;;  %v124_v42 = vld [vmem:[%s1661_s1 + $0x1b0] sm:$0xff]  ;;  %v125_v43 = vld [vmem:[%s1661_s1 + $0x1b8] sm:$0xff]  ;;  %v95_v48 = vld [vmem:[%s1661_s1 + $0xc8] sm:$0xff]  ;;  %v992_v49 = vpack.c.bf16 %v77_v41, %v76_v38 }
  0x34   :  { %1019 = vmatprep.subr.bf16.mxu1 %v1018_v35  ;;  %v1022_v44 = vpack.c.bf16 %v125_v43, %v124_v42  ;;  %v108_v45 = vld [vmem:[%s1661_s1 + $0x130] sm:$0xff]  ;;  %v109_v46 = vld [vmem:[%s1661_s1 + $0x138] sm:$0xff]  ;;  %v126_v50 = vld [vmem:[%s1661_s1 + $0x1c0] sm:$0xff]  ;;  %v994_v53 = vpack.c.bf16 %v95_v48, %v94_v47 }
  0x35   :  { %989 = vmatpush3.bf16.msra.mxu0 %v988_v34  ;;  %v127_v51 = vld [vmem:[%s1661_s1 + $0x1c8] sm:$0xff]  ;;  %v1024_v52 = vpack.c.bf16 %v109_v46, %v108_v45  ;;  %v78_v54 = vld [vmem:[%s1661_s1 + $0x40] sm:$0xff]  ;;  %v96_v59 = vld [vmem:[%s1661_s1 + $0xd0] sm:$0xff] }
  0x36   :  { %991 = vmatprep.subr.bf16.mxu0 %v990_v40  ;;  %v79_v55 = vld [vmem:[%s1661_s1 + $0x48] sm:$0xff]  ;;  %v110_v56 = vld [vmem:[%s1661_s1 + $0x140] sm:$0xff]  ;;  %v1026_v57 = vpack.c.bf16 %v127_v51, %v126_v50  ;;  %v97_v60 = vld [vmem:[%s1661_s1 + $0xd8] sm:$0xff]  ;;  %v1213_v51 = vmov 0.0|0.0  }
  0x37   :  { %1021 = vmatpush3.bf16.msra.mxu1 %v1020_v39  ;;  %v111_v58 = vld [vmem:[%s1661_s1 + $0x148] sm:$0xff]  ;;  %v128_v61 = vld [vmem:[%s1661_s1 + $0x1d0] sm:$0xff]  ;;  %v129_v62 = vld [vmem:[%s1661_s1 + $0x1d8] sm:$0xff]  ;;  %v996_v63 = vpack.c.bf16 %v79_v55, %v78_v54  ;;  %v998_v1 = vpack.c.bf16 %v97_v60, %v96_v59 }
  0x38   :  { %1023 = vmatprep.subr.bf16.mxu1 %v1022_v44  ;;  %v1028_v0 = vpack.c.bf16 %v111_v58, %v110_v56  ;;  %v80_v2 = vld [vmem:[%s1661_s1 + $0x50] sm:$0xff]  ;;  %v81_v3 = vld [vmem:[%s1661_s1 + $0x58] sm:$0xff]  ;;  %v1030_v5 = vpack.c.bf16 %v129_v62, %v128_v61  ;;  %v98_v7 = vld [vmem:[%s1661_s1 + $0xe0] sm:$0xff]  ;;  %v1215_v61 = vmov 0.0  }
  0x39   :  { %993 = vmatpush3.bf16.msra.mxu0 %v992_v49  ;;  %v112_v4 = vld [vmem:[%s1661_s1 + $0x150] sm:$0xff]  ;;  %v113_v6 = vld [vmem:[%s1661_s1 + $0x158] sm:$0xff]  ;;  %v99_v8 = vld [vmem:[%s1661_s1 + $0xe8] sm:$0xff]  ;;  %v1000_v11 = vpack.c.bf16 %v81_v3, %v80_v2 }
  0x3a   :  { %995 = vmatprep.subr.bf16.mxu0 %v994_v53  ;;  %v130_v9 = vld [vmem:[%s1661_s1 + $0x1e0] sm:$0xff]  ;;  %v131_v10 = vld [vmem:[%s1661_s1 + $0x1e8] sm:$0xff]  ;;  %v1032_v14 = vpack.c.bf16 %v113_v6, %v112_v4  ;;  %v1002_v15 = vpack.c.bf16 %v99_v8, %v98_v7  ;;  %v100_v20 = vld [vmem:[%s1661_s1 + $0xf0] sm:$0xff] }
  0x3b   :  { %1025 = vmatpush3.bf16.msra.mxu1 %v1024_v52  ;;  %v82_v12 = vld [vmem:[%s1661_s1 + $0x60] sm:$0xff]  ;;  %v64_v13 = vld [vmem:[%s1660_s0 + $0x8] sm:$0xff]  ;;  %v1034_v19 = vpack.c.bf16 %v131_v10, %v130_v9  ;;  %v101_v21 = vld [vmem:[%s1661_s1 + $0xf8] sm:$0xff] }
  0x3c   :  { %1027 = vmatprep.subr.bf16.mxu1 %v1026_v57  ;;  %v83_v16 = vld [vmem:[%s1661_s1 + $0x68] sm:$0xff]  ;;  %v114_v17 = vld [vmem:[%s1661_s1 + $0x160] sm:$0xff]  ;;  %243 = vmatprep.mubr.f32.mxu0 %v64_v13  ;;  %v66_v22 = vld [vmem:[%s1660_s0 + $0x18] sm:$0xff]  ;;  %v1006_v27 = vpack.c.bf16 %v101_v21, %v100_v20 }
  0x3d   :  { %997 = vmatpush3.bf16.msra.mxu0 %v996_v63  ;;  %v115_v18 = vld [vmem:[%s1661_s1 + $0x168] sm:$0xff]  ;;  %v132_v23 = vld [vmem:[%s1661_s1 + $0x1f0] sm:$0xff]  ;;  %v133_v24 = vld [vmem:[%s1661_s1 + $0x1f8] sm:$0xff]  ;;  %313 = vmatprep.mubr.f32.mxu1 %v66_v22  ;;  %v1004_v25 = vpack.c.bf16 %v83_v16, %v82_v12 }
  0x3e   :  { %999 = vmatprep.subr.bf16.mxu0 %v998_v1  ;;  %v1036_v26 = vpack.c.bf16 %v115_v18, %v114_v17  ;;  %v84_v28 = vld [vmem:[%s1661_s1 + $0x70] sm:$0xff]  ;;  %v85_v29 = vld [vmem:[%s1661_s1 + $0x78] sm:$0xff]  ;;  %v1038_v31 = vpack.c.bf16 %v133_v24, %v132_v23  ;;  %v150_v33 = vld [vmem:[%s1661_s1 + $0x280] sm:$0xff] }
  0x3f   :  { %1029 = vmatpush3.bf16.msra.mxu1 %v1028_v0  ;;  %v116_v30 = vld [vmem:[%s1661_s1 + $0x170] sm:$0xff]  ;;  %v117_v32 = vld [vmem:[%s1661_s1 + $0x178] sm:$0xff]  ;;  %v151_v34 = vld [vmem:[%s1661_s1 + $0x288] sm:$0xff]  ;;  %v1008_v35 = vpack.c.bf16 %v85_v29, %v84_v28 }
  0x40   :  { %1031 = vmatprep.subr.bf16.mxu1 %v1030_v5  ;;  %v1040_v36 = vpack.c.bf16 %v117_v32, %v116_v30  ;;  %v1042_v37 = vpack.c.bf16 %v151_v34, %v150_v33  ;;  %v134_v38 = vld [vmem:[%s1661_s1 + $0x200] sm:$0xff]  ;;  %v135_v39 = vld [vmem:[%s1661_s1 + $0x208] sm:$0xff]  ;;  %v152_v40 = vld [vmem:[%s1661_s1 + $0x290] sm:$0xff] }
  0x41   :  { %1001 = vmatpush3.bf16.msra.mxu0 %v1000_v11  ;;  %v153_v41 = vld [vmem:[%s1661_s1 + $0x298] sm:$0xff]  ;;  %v63_v42 = vld [vmem:[%s1660_s0] sm:$0xff]  ;;  %v1044_v43 = vpack.c.bf16 %v135_v39, %v134_v38  ;;  %v65_v44 = vld [vmem:[%s1660_s0 + $0x10] sm:$0xff] }
  0x42   :  { %1003 = vmatprep.subr.bf16.mxu0 %v1002_v15  ;;  %v136_v45 = vld [vmem:[%s1661_s1 + $0x210] sm:$0xff]  ;;  %v1046_v46 = vpack.c.bf16 %v153_v41, %v152_v40  ;;  %v137_v47 = vld [vmem:[%s1661_s1 + $0x218] sm:$0xff]  ;;  %v154_v48 = vld [vmem:[%s1661_s1 + $0x2a0] sm:$0xff] }
  0x43   :  { %1033 = vmatpush3.bf16.msra.mxu1 %v1032_v14  ;;  %v155_v49 = vld [vmem:[%s1661_s1 + $0x2a8] sm:$0xff]  ;;  %v166_v52 = vld [vmem:[%s1661_s1 + $0x300] sm:$0xff]  ;;  %v1048_v55 = vpack.c.bf16 %v137_v47, %v136_v45  ;;  %v156_v59 = vld [vmem:[%s1661_s1 + $0x2b0] sm:$0xff] }
  0x44   :  { %1035 = vmatprep.subr.bf16.mxu1 %v1034_v19  ;;  %v68_v50 = vld [vmem:[%s1660_s0 + $0x28] sm:$0xff]  ;;  %v1050_v56 = vpack.c.bf16 %v155_v49, %v154_v48  ;;  %v138_v57 = vld [vmem:[%s1661_s1 + $0x220] sm:$0xff]  ;;  %v157_v60 = vld [vmem:[%s1661_s1 + $0x2b8] sm:$0xff] }
  0x45   :  { %1005 = vmatpush3.bf16.msra.mxu0 %v1004_v25  ;;  %v167_v53 = vld [vmem:[%s1661_s1 + $0x308] sm:$0xff]  ;;  %v69_v62 = vld [vmem:[%s1660_s0 + $0x30] sm:$0xff]  ;;  %v1054_v0 = vpack.c.bf16 %v157_v60, %v156_v59  ;;  %v141_v2 = vld [vmem:[%s1661_s1 + $0x238] sm:$0xff] }
  0x46   :  { %1007 = vmatprep.subr.bf16.mxu0 %v1006_v27  ;;  %v1075_v54 = vpack.c.bf16 %v167_v53, %v166_v52  ;;  %v139_v58 = vld [vmem:[%s1661_s1 + $0x228] sm:$0xff]  ;;  %v140_v1 = vld [vmem:[%s1661_s1 + $0x230] sm:$0xff]  ;;  %v158_v3 = vld [vmem:[%s1661_s1 + $0x2c0] sm:$0xff] }
  0x47   :  { %1037 = vmatpush3.bf16.msra.mxu1 %v1036_v26  ;;  %v1052_v63 = vpack.c.bf16 %v139_v58, %v138_v57  ;;  %v159_v4 = vld [vmem:[%s1661_s1 + $0x2c8] sm:$0xff]  ;;  %v1056_v5 = vpack.c.bf16 %v141_v2, %v140_v1  ;;  %v142_v7 = vld [vmem:[%s1661_s1 + $0x240] sm:$0xff]  ;;  %v160_v9 = vld [vmem:[%s1661_s1 + $0x2d0] sm:$0xff] }
  0x48   :  { %1039 = vmatprep.subr.bf16.mxu1 %v1038_v31  ;;  %v1058_v6 = vpack.c.bf16 %v159_v4, %v158_v3  ;;  %v143_v8 = vld [vmem:[%s1661_s1 + $0x248] sm:$0xff]  ;;  %v161_v10 = vld [vmem:[%s1661_s1 + $0x2d8] sm:$0xff]  ;;  %v144_v13 = vld [vmem:[%s1661_s1 + $0x250] sm:$0xff] }
  0x49   :  { %1009 = vmatpush3.bf16.msra.mxu0 %v1008_v35  ;;  %v1060_v11 = vpack.c.bf16 %v143_v8, %v142_v7  ;;  %v1062_v12 = vpack.c.bf16 %v161_v10, %v160_v9  ;;  %v145_v14 = vld [vmem:[%s1661_s1 + $0x258] sm:$0xff]  ;;  %v162_v15 = vld [vmem:[%s1661_s1 + $0x2e0] sm:$0xff]  ;;  %v163_v16 = vld [vmem:[%s1661_s1 + $0x2e8] sm:$0xff] }
  0x4a   :  { %1043 = vmatprep.subr.bf16.mxu0 %v1042_v37  ;;  %v1064_v17 = vpack.c.bf16 %v145_v14, %v144_v13  ;;  %v1066_v18 = vpack.c.bf16 %v163_v16, %v162_v15  ;;  %v146_v19 = vld [vmem:[%s1661_s1 + $0x260] sm:$0xff]  ;;  %v147_v20 = vld [vmem:[%s1661_s1 + $0x268] sm:$0xff]  ;;  %v164_v21 = vld [vmem:[%s1661_s1 + $0x2f0] sm:$0xff] }
  0x4b   :  { %1041 = vmatpush3.bf16.msra.mxu1 %v1040_v36  ;;  %v165_v22 = vld [vmem:[%s1661_s1 + $0x2f8] sm:$0xff]  ;;  %v1068_v23 = vpack.c.bf16 %v147_v20, %v146_v19  ;;  %v148_v25 = vld [vmem:[%s1661_s1 + $0x270] sm:$0xff]  ;;  %v67_v28 = vld [vmem:[%s1660_s0 + $0x20] sm:$0xff] }
  0x4c   :  { %1074 = vmatprep.subr.bf16.mxu1 %v1213_v51  ;;  %244 = vmatmul.mubr.f32.vlgmr.msra.gmra.mrb[0].mxu0 %v63_v42  ;;  %v1070_v24 = vpack.c.bf16 %v165_v22, %v164_v21  ;;  %v149_v26 = vld [vmem:[%s1661_s1 + $0x278] sm:$0xff]  ;;  %v460_v29 = vld [vmem:[#allocation3] sm:$0xff]  ;;  %v461_v30 = vld [vmem:[#allocation3 + $0x8] sm:$0xff] }
  0x4d   :  { %1045 = vmatpush3.bf16.msra.mxu0 %v1044_v43  ;;  %383 = vmatprep.mubr.f32.mxu0 %v68_v50  ;;  %v1072_v27 = vpack.c.bf16 %v149_v26, %v148_v25  ;;  %v462_v31 = vld [vmem:[#allocation3 + $0x10] sm:$0xff]  ;;  %v1078_v32 = vpack.c.bf16 %v461_v30, %v460_v29  ;;  %v463_v33 = vld [vmem:[#allocation3 + $0x18] sm:$0xff]  ;;  %v464_v35 = vld [vmem:[#allocation3 + $0x20] sm:$0xff] }
  0x4e   :  { %314 = vmatmul.mubr.f32.vlgmr.msra.gmra.mrb[0].mxu1 %v65_v44  ;;  %1047 = vmatprep.subr.bf16.mxu0 %v1046_v46  ;;  %v1081_v34 = vpack.c.bf16 %v463_v33, %v462_v31  ;;  %v465_v36 = vld [vmem:[#allocation3 + $0x28] sm:$0xff]  ;;  %v466_v38 = vld [vmem:[#allocation3 + $0x30] sm:$0xff]  ;;  %v467_v39 = vld [vmem:[#allocation3 + $0x38] sm:$0xff] }
  0x4f   :  { %1076 = vmatpush3.bf16.msra.mxu1 %v1075_v54  ;;  %900 = vmatprep.mubr.msk.f32.mxu1 %vm1214_vm0, %v1215_v61  ;;  %v1084_v37 = vpack.c.bf16 %v465_v36, %v464_v35  ;;  %v1087_v40 = vpack.c.bf16 %v467_v39, %v466_v38  ;;  %v468_v41 = vld [vmem:[#allocation3 + $0x40] sm:$0xff]  ;;  %v469_v42 = vld [vmem:[#allocation3 + $0x48] sm:$0xff]  ;;  %v470_v44 = vld [vmem:[#allocation3 + $0x50] sm:$0xff] }
  0x50   :  { %1077 = vmatprep.subr.bf16.mxu1 %v1213_v51  ;;  %v1090_v43 = vpack.c.bf16 %v469_v42, %v468_v41  ;;  %v471_v45 = vld [vmem:[#allocation3 + $0x58] sm:$0xff]  ;;  %v472_v47 = vld [vmem:[#allocation3 + $0x60] sm:$0xff]  ;;  %v473_v48 = vld [vmem:[#allocation3 + $0x68] sm:$0xff] }
  0x51   :  { %1049 = vmatpush3.bf16.msra.mxu0 %v1048_v55  ;;  %v1093_v46 = vpack.c.bf16 %v471_v45, %v470_v44  ;;  %v1096_v49 = vpack.c.bf16 %v473_v48, %v472_v47  ;;  %v474_v50 = vld [vmem:[#allocation3 + $0x70] sm:$0xff]  ;;  %v475_v52 = vld [vmem:[#allocation3 + $0x78] sm:$0xff]  ;;  %v554_v54 = vld [vmem:[#allocation6] sm:$0xff] }
  0x52   :  { %1051 = vmatprep.subr.bf16.mxu0 %v1050_v56  ;;  %901 = vmatmul.mubr.msk.f32.vlgmr.msra.gmra.mrb[2].mxu1 %vm175_vm1, %v69_v62  ;;  %v1099_v53 = vpack.c.bf16 %v475_v52, %v474_v50  ;;  %v555_v55 = vld [vmem:[#allocation6 + $0x8] sm:$0xff]  ;;  %v556_v56 = vld [vmem:[#allocation6 + $0x10] sm:$0xff]  ;;  %v557_v58 = vld [vmem:[#allocation6 + $0x18] sm:$0xff] }
  0x53   :  { %935 = vmatprep.mubr.msk.f32.mxu1 %vm1214_vm0, %v1215_v61  ;;  %1079 = vmatpush3.bf16.msra.mxu1 %v1078_v32  ;;  %v1102_v57 = vpack.c.bf16 %v555_v55, %v554_v54  ;;  %v1105_v59 = vpack.c.bf16 %v557_v58, %v556_v56  ;;  %v558_v60 = vld [vmem:[#allocation6 + $0x20] sm:$0xff]  ;;  %v559_v62 = vld [vmem:[#allocation6 + $0x28] sm:$0xff]  ;;  %v561_v1 = vld [vmem:[#allocation6 + $0x38] sm:$0xff] }
  0x54   :  { %1080 = vmatprep.subr.bf16.mxu1 %v1213_v51  ;;  %v562_v3 = vld [vmem:[#allocation6 + $0x40] sm:$0xff]  ;;  %v563_v4 = vld [vmem:[#allocation6 + $0x48] sm:$0xff]  ;;  %v565_v7 = vld [vmem:[#allocation6 + $0x58] sm:$0xff] }
  0x55   :  { %1053 = vmatpush3.bf16.msra.mxu0 %v1052_v63  ;;  %v1108_v63 = vpack.c.bf16 %v559_v62, %v558_v60  ;;  %v566_v9 = vld [vmem:[#allocation6 + $0x60] sm:$0xff]  ;;  %v567_v10 = vld [vmem:[#allocation6 + $0x68] sm:$0xff]  ;;  %v748_v13 = vld [vmem:[%s1662_s2] ss:$0 sm:$0xff] }
  0x56   :  { %1055 = vmatprep.subr.bf16.mxu0 %v1054_v0  ;;  %v560_v0 = vld [vmem:[#allocation6 + $0x30] sm:$0xff]  ;;  %v569_v29 = vld [vmem:[#allocation6 + $0x78] sm:$0xff] }
  0x57   :  { %1082 = vmatpush3.bf16.msra.mxu1 %v1081_v34  ;;  %v1111_v2 = vpack.c.bf16 %v561_v1, %v560_v0  ;;  %v750_v31 = vld [vmem:[%s1664_s4] ss:$0 sm:$0xff] }
  0x58   :  { %1083 = vmatprep.subr.bf16.mxu1 %v1213_v51  ;;  %v649_v36 = vld [vmem:[#allocation2] sm:$0x1] }
  0x59   :  { %1057 = vmatpush3.bf16.msra.mxu0 %v1056_v5  ;;  %v1114_v5 = vpack.c.bf16 %v563_v4, %v562_v3  ;;  %v648_v42 = vld [vmem:[%s1667_s7] sm:$0x1] }
  0x5a   :  { %1059 = vmatprep.subr.bf16.mxu0 %v1058_v6  ;;  %v564_v6 = vld [vmem:[#allocation6 + $0x50] sm:$0xff] }
  0x5b   :  { %1085 = vmatpush3.bf16.msra.mxu1 %v1084_v37  ;;  %v1117_v8 = vpack.c.bf16 %v565_v7, %v564_v6  ;;  %v1216_v37 = vmov 0  }
  0x5c   :  { %1086 = vmatprep.subr.bf16.mxu1 %v1213_v51  ;;  %1134 = vset.pattern.permute.xlu0 %v1216_v37 }
  0x5d   :  { %1061 = vmatpush3.bf16.msra.mxu0 %v1060_v11  ;;  %v1120_v11 = vpack.c.bf16 %v567_v10, %v566_v9  ;;  %652 = vperm.xlu0 %1134, %v649_v36  }
  0x5e   :  { %1063 = vmatprep.subr.bf16.mxu0 %v1062_v12 }
  0x5f   :  { %1088 = vmatpush3.bf16.msra.mxu1 %v1087_v40 }
  0x60   :  { %1089 = vmatprep.subr.bf16.mxu1 %v1213_v51 }
  0x61   :  { %1065 = vmatpush3.bf16.msra.mxu0 %v1064_v17 }
  0x62   :  { %1067 = vmatprep.subr.bf16.mxu0 %v1066_v18 }
  0x63   :  { %1091 = vmatpush3.bf16.msra.mxu1 %v1090_v43  ;;  %v655_v43 = vlaneseq }
  0x64   :  { %1092 = vmatprep.subr.bf16.mxu1 %v1213_v51 }
  0x65   :  { %1069 = vmatpush3.bf16.msra.mxu0 %v1068_v23  ;;  %v656_v44 = vshrl.u32 %v655_v43, 7 }
  0x66   :  { %1071 = vmatprep.subr.bf16.mxu0 %v1070_v24 }
  0x67   :  { %1094 = vmatpush3.bf16.msra.mxu1 %v1093_v46  ;;  %v657_v45 = vsub.s32 0, %v656_v44 }
  0x68   :  { %1095 = vmatprep.subr.bf16.mxu1 %v1213_v51 }
  0x69   :  { %1073 = vmatpush3.bf16.msra.mxu0 %v1072_v27 }
  0x6a   :  { %1101 = vmatprep.subr.bf16.mxu0 %v1213_v51 }
  0x6b   :  { %1097 = vmatpush3.bf16.msra.mxu1 %v1096_v49 }
  0x6c   :  { %384 = vmatmul.mubr.f32.vlgmr.msra.gmra.mrb[2].mxu0 %v67_v28  ;;  %1098 = vmatprep.subr.bf16.mxu1 %v1213_v51  ;;  %v568_v28 = vld [vmem:[#allocation6 + $0x70] sm:$0xff] }
  0x6d   :  { %970 = vmatprep.mubr.msk.f32.mxu0 %vm1214_vm0, %v1215_v61  ;;  %1103 = vmatpush3.bf16.msra.mxu0 %v1102_v57  ;;  %v1123_v30 = vpack.c.bf16 %v569_v29, %v568_v28 }
  0x6e   :  { %1104 = vmatprep.subr.bf16.mxu0 %v1213_v51 }
  0x6f   :  { %1100 = vmatpush3.bf16.msra.mxu1 %v1099_v53 }
  0x70   :  { %973 = vmatprep.subr.mxu1 %v1215_v61 }
  0x71   :  { %1106 = vmatpush3.bf16.msra.mxu0 %v1105_v59 }
  0x72   :  { %1107 = vmatprep.subr.bf16.mxu0 %v1213_v51 }
  0x75   :  { %1109 = vmatpush3.bf16.msra.mxu0 %v1108_v63 }
  0x76   :  { %1110 = vmatprep.subr.bf16.mxu0 %v1213_v51 }
  0x79   :  { %1112 = vmatpush3.bf16.msra.mxu0 %v1111_v2 }
  0x7a   :  { %1113 = vmatprep.subr.bf16.mxu0 %v1213_v51 }
  0x7d   :  { %1115 = vmatpush3.bf16.msra.mxu0 %v1114_v5 }
  0x7e   :  { %1116 = vmatprep.subr.bf16.mxu0 %v1213_v51 }
  0x81   :  { %1118 = vmatpush3.bf16.msra.mxu0 %v1117_v8 }
  0x82   :  { %1119 = vmatprep.subr.bf16.mxu0 %v1213_v51 }
  0x85   :  { %1121 = vmatpush3.bf16.msra.mxu0 %v1120_v11 }
  0x86   :  { %1122 = vmatprep.subr.bf16.mxu0 %v1213_v51 }
  0x89   :  { %1124 = vmatpush3.bf16.msra.mxu0 %v1123_v30 }
  0xdc   :  { %v653_v46 = vpop.permute.xlu0 %652 }
  0xdd   :  { %v658_v47 = vrot.slane %v653_v46, %v657_v45 }
 0x11f   :  { %v784_v12 = vpop.f32.mrb[0].mxu0 }
 0x120   :  { %v785_v14 = vpop.f32.mrb[1].mxu0 }
 0x121   :  { %v819_v15 = vpop.f32.mrb[0].mxu1  ;;  %v786_v16 = vadd.f32 %v785_v14, %v784_v12 }
 0x122   :  { %v820_v17 = vpop.f32.mrb[1].mxu1 }
 0x123   :  { %v821_v18 = vadd.f32 %v820_v17, %v819_v15  ;;  %v246_v19 = vadd.f32 %v786_v16, %v748_v13 }
 0x125   :  { %v316_v20 = vadd.f32 %v821_v18, %v246_v19  ;;  %v455_v21 = vpop.f32.mrb[2].mxu1 }
 0x126   :  { %v902_v22 = vpop.f32.mrb[3].mxu1 }
 0x13f   :  { %v854_v23 = vpop.f32.mrb[2].mxu0 }
 0x140   :  { %v855_v24 = vpop.f32.mrb[3].mxu0 }
 0x141   :  { %v856_v25 = vadd.f32 %v855_v24, %v854_v23 }
 0x143   :  { %v386_v26 = vadd.f32 %v856_v25, %v316_v20 }
 0x145   :  { %v456_v27 = vadd.f32 %v455_v21, %v386_v26 }
 0x147   :  { %v459_v51 = vmax.f32 %v456_v27, 0.0 }
 0x149   :  { %936 = vmatmul.mubr.f32.vlgmr.msra.gmra.mrb[4].mxu1 %v459_v51 }
 0x14a   :  { %975 = vmatprep.mubr.msk.f32.mxu1 %vm1214_vm0, %v1215_v61  ;;  %v751_v61 = vld [vmem:[%s1666_s6] ss:$0 sm:$0xff]  ;;  %s1217_s6 = smov [#allocation8]  }
 0x14b   :  { %s738_s3 = sshll.u32 %s1217_s6, 4  ;;  %s739_s3 = int_to_ptr.vmem [resolvable:$true] %s738_s3 }
 0x14c   :  { %s1181_s12 = scalar_lea.vmem %s739_s3, 16  ;;  %s1185_s14 = scalar_lea.vmem %s739_s3, 32 }
 0x14d   :  { %p1182_p2 = scmp.ne.s32.totalorder %s739_s3, %s1181_s12  ;;  %p1186_p3 = scmp.lt.s32.totalorder %s739_s3, %s739_s3 }
 0x14e   :  { %p1187_p4 = scmp.lt.s32.totalorder %s1185_s14, %s1181_s12 }
 0x150   :  { %p1188_p5 = por %p1187_p4, %p1186_p3 }
 0x152   :  { %p1189_p6 = pnand %p1188_p5, %p1182_p2 }
 0x21c   :  { %v549_v32 = vpop.f32.mrb[4].mxu1 }
 0x21d   :  { %v550_v33 = vadd.f32 %v750_v31, %v549_v32  ;;  %v937_v34 = vpop.f32.mrb[5].mxu1 }
 0x21f   :  { %v553_v35 = vmax.f32 %v550_v33, 0.0 }
 0x221   :  { %971 = vmatmul.mubr.f32.vlgmr.msra.gmra.mrb[4].mxu0 %v553_v35 }
 0x2f4   :  { %v643_v38 = vpop.f32.mrb[4].mxu0 }
 0x2f5   :  { %v644_v39 = vadd.f32 %v751_v61, %v643_v38  ;;  %v972_v40 = vpop.f32.mrb[5].mxu0 }
 0x2f7   :  { %v647_v41 = vmax.f32 %v644_v39, 0.0 }
 0x2f9   :  { %974 = vmatpush3.xpose.msra.mxu1 %v647_v41 }
 0x2fc   :  { %976 = vmatmul.mubr.f32.vlgmr.msra.gmra.mrb[6].mxu1 %v648_v42 }
 0x3cf   :  { %v725_v48 = vpop.f32.mrb[6].mxu1 }
 0x3d0   :  { %v726_v49 = vadd.f32 %v725_v48, %v658_v47  ;;  %v977_v50 = vpop.f32.mrb[7].mxu1 }
 0x3d2   :  { %1135 = vtanh.f32 %v726_v49 }
 0x3dc   :  { %v1136_v52 = vpop.eup %1135 }
 0x3dd   :  { %731 = vst.msk [vmem:[#allocation8] sm:$0x1] %vm730_vm2, %v1136_v52 }
 0x3de   :  { %1192 = shalt.err (!%p1189_p6)
}
 0x3df   :  { %s1193_s16 = scalar_lea.hbm %s1669_s9, 16 }
 0x3e0   :  { %p1194_p7 = scmp.ne.s32.totalorder %s1669_s9, %s1193_s16  ;;  %p1197_p8 = scmp.lt.u32.totalorder %s1193_s16, %s1669_s9 }
 0x3e2   :  { %p1199_p9 = pnand %p1197_p8, %p1194_p7 }
 0x3e4   :  { %1202 = shalt.err (!%p1199_p9)
}
 0x3e5   :  { %741 = dma.vmem_to_hbm [thread:$0]  %s739_s3, 16, %s1669_s9, [#allocation5]  }
 0x3e6   :  { %1207 = dma.done.wait [#allocation5], 16  }
 0x3e7   :  { %1208 = vsyncadd [#allocation5], 4294967280 }
 0x3e8   :  { %745 = vsyncpa [#allocation4], 1 }
 0x3e9   :  { %746 = vsyncpa [#allocation7], 1 }
 0x3ea   :  { %747 = vsyncpa [#allocation5], 1 }

</bundles_post_ra>
